<compile_context>
chip_gen: v7x
topology: tpu7x:2x2x1
jax: 0.10.0
libtpu: 0.0.40
codegen_flags: <defaults>
</compile_context>

<pallas_src>
import functools

import jax
import jax.numpy as jnp
from jax.experimental import pallas as pl
from jax.experimental.pallas import tpu as pltpu

_LANE = 128
_SUBLANE = 8


def _silu(x):
    return x * jax.nn.sigmoid(x)


def _round_up(x, m):
    return (x + m - 1) // m * m


def siamese_head_kernel(p1_ref, p2_ref,
                        w1_ref, b1_ref,      # branch1 layer 1: (H1, M), (1, M)
                        w2_ref, b2_ref,      # branch1 layer 2: (M, D),  (1, D)
                        w3_ref, b3_ref,      # branch2 layer 1: (H2, D), (1, D)
                        wc_ref, bc_ref,      # classifier:      (D, Lp), (1, Lp)
                        logits_ref):
    wdt = w1_ref.dtype  # matmul operand dtype (f32 or bf16); accumulation is f32.

    # ----- branch 1 -----
    h1 = jnp.dot(p1_ref[...], w1_ref[...],
                 preferred_element_type=jnp.float32) + b1_ref[...]
    h1 = _silu(h1)                                            # SiLU (f32 elementwise)
    h1 = jnp.dot(h1.astype(wdt), w2_ref[...],
                 preferred_element_type=jnp.float32) + b2_ref[...]
    h1 = jnp.maximum(h1, 0.0)                                 # ReLU

    # ----- branch 2 -----
    h2 = jnp.dot(p2_ref[...], w3_ref[...],
                 preferred_element_type=jnp.float32) + b3_ref[...]
    h2 = _silu(h2)                                            # SiLU

    # Dropout layers are identity in eval mode (no PRNG needed).
    # TODO(synk): training-mode dropout would use pltpu.prng_seed/prng_random_bits.
    # ----- JoinLayers: SiLU(x) - SiLU(y) -----
    joined = _silu(h1) - _silu(h2)

    # ----- classifier (lane-padded to Lp columns -> unmasked vst) -----
    logits = jnp.dot(joined.astype(wdt), wc_ref[...],
                     preferred_element_type=jnp.float32) + bc_ref[...]
    logits_ref[...] = logits.astype(logits_ref.dtype)


@functools.partial(jax.jit, static_argnames=("weight_dtype", "batch_tile"))
def siamese_classification_head(sequence_output1, pooled_output1,
                                sequence_output2, pooled_output2,
                                params, labels=None, *,
                                weight_dtype=jnp.bfloat16,
                                batch_tile=512):
    """Mirrors SiameseClassificationHead.forward (eval mode). Returns (logits, loss)."""
    del sequence_output1, sequence_output2, labels  # unused in the reference forward
    B, H1 = pooled_output1.shape
    H2 = pooled_output2.shape[1]
    M = params["w1"].shape[1]
    D = params["w2"].shape[1]
    L = params["wc"].shape[1]

    wdt = jnp.dtype(weight_dtype)
    Lp = _round_up(max(L, _LANE), _LANE)            # lane-dense classifier output

    # Batch tile: multiple of the sublane size, capped at `batch_tile`.
    TB = min(batch_tile, _round_up(B, _SUBLANE))
    B_pad = _round_up(B, TB)
    n_tiles = B_pad // TB

    def _pad_batch(x):
        x = x.astype(wdt)
        if x.shape[0] == B_pad:
            return x
        return jnp.pad(x, ((0, B_pad - x.shape[0]), (0, 0)))

    p1 = _pad_batch(pooled_output1)
    p2 = _pad_batch(pooled_output2)

    w1 = params["w1"].astype(wdt)
    w2 = params["w2"].astype(wdt)
    w3 = params["w3"].astype(wdt)
    b1 = params["b1"].astype(jnp.float32)
    b2 = params["b2"].astype(jnp.float32)
    b3 = params["b3"].astype(jnp.float32)
    # Zero-pad classifier to Lp output lanes -> unmasked stores on the hot path.
    wc = jnp.zeros((D, Lp), wdt).at[:, :L].set(params["wc"].astype(wdt))
    bc = jnp.zeros((1, Lp), jnp.float32).at[:, :L].set(params["bc"].astype(jnp.float32))

    def act_spec(h):
        return pl.BlockSpec((TB, h), lambda i: (i, 0))

    def resident_spec(shape):
        # Full-shape block, constant index -> DMA'd once, stays in VMEM.
        return pl.BlockSpec(shape, lambda i: (0, 0))

    itemsize = wdt.itemsize
    weight_elems = H1 * M + M * D + H2 * D + D * Lp
    cost = pl.CostEstimate(
        flops=2 * B_pad * (H1 * M + M * D + H2 * D + D * Lp),
        transcendentals=B_pad * (M + 3 * D),
        bytes_accessed=(B_pad * (H1 + H2)) * itemsize
        + weight_elems * itemsize
        + (M + 2 * D + Lp) * 4
        + B_pad * Lp * 4,
    )

    logits_pad = pl.pallas_call(
        siamese_head_kernel,
        out_shape=jax.ShapeDtypeStruct((B_pad, Lp), jnp.float32),
        grid_spec=pltpu.PrefetchScalarGridSpec(
            num_scalar_prefetch=0,
            grid=(n_tiles,),
            in_specs=[
                act_spec(H1), act_spec(H2),
                resident_spec((H1, M)), resident_spec((1, M)),
                resident_spec((M, D)), resident_spec((1, D)),
                resident_spec((H2, D)), resident_spec((1, D)),
                resident_spec((D, Lp)), resident_spec((1, Lp)),
            ],
            out_specs=pl.BlockSpec((TB, Lp), lambda i: (i, 0)),
        ),
        compiler_params=pltpu.CompilerParams(
            dimension_semantics=("parallel",),          # shard batch tiles on v7x's 2 TCs
            vmem_limit_bytes=48 * 1024 * 1024,          # > default scoped, < v7x 64 MiB
        ),
        cost_estimate=cost,
    )(p1, p2, w1, b1, w2, b2, w3, b3, wc, bc)

    logits = logits_pad[:B, :L]
    loss = None  # labels=None path; loss branches are host-side glue, not the hot path
    return logits, loss


# ---------------------------------------------------------------------------
# Parameter init matching the PyTorch module (xavier_normal gain=1.43, bias U(-1.43, 1.43))
# ---------------------------------------------------------------------------
def _xavier_normal(key, out_f, in_f, gain=1.43):
    std = gain * jnp.sqrt(2.0 / (in_f + out_f))
    return jax.random.normal(key, (out_f, in_f), jnp.float32) * std


def _bias_uniform(key, n):
    return jax.random.uniform(key, (n,), jnp.float32, minval=-1.43, maxval=1.43)


def init_params(key, hidden_size, hidden_size2, mid, d_final, num_labels):
    keys = jax.random.split(key, 8)
    # stored PyTorch-style (out, in), then transposed to (in, out) for the kernel
    w1 = _xavier_normal(keys[0], mid, hidden_size)
    b1 = _bias_uniform(keys[1], mid)
    w2 = _xavier_normal(keys[2], d_final, mid)
    b2 = _bias_uniform(keys[3], d_final)
    w3 = _xavier_normal(keys[4], d_final, hidden_size2)
    b3 = _bias_uniform(keys[5], d_final)
    wc = _xavier_normal(keys[6], num_labels, d_final)
    bc = _bias_uniform(keys[7], num_labels)
    return {
        "w1": w1.T, "b1": b1.reshape(1, -1),
        "w2": w2.T, "b2": b2.reshape(1, -1),
        "w3": w3.T, "b3": b3.reshape(1, -1),
        "wc": wc.T, "bc": bc.reshape(1, -1),
    }


def _reference(p1, p2, params):
    h1 = _silu(p1 @ params["w1"] + params["b1"])
    h1 = jnp.maximum(h1 @ params["w2"] + params["b2"], 0.0)
    h2 = _silu(p2 @ params["w3"] + params["b3"])
    joined = _silu(h1) - _silu(h2)
    return joined @ params["wc"] + params["bc"]


if __name__ == "__main__":
    B, SEQ = 8, 8
    HIDDEN, HIDDEN2, MID, D_FINAL, NUM_LABELS = 32, 32, 64, 32, 8

    key = jax.random.PRNGKey(0)
    k_seq1, k_p1, k_seq2, k_p2, k_params = jax.random.split(key, 5)

    sequence_output1 = jax.random.normal(k_seq1, (B, SEQ, HIDDEN), jnp.float32)
    pooled_output1 = jax.random.normal(k_p1, (B, HIDDEN), jnp.float32)
    sequence_output2 = jax.random.normal(k_seq2, (B, SEQ, HIDDEN2), jnp.float32)
    pooled_output2 = jax.random.normal(k_p2, (B, HIDDEN2), jnp.float32)

    params = init_params(k_params, HIDDEN, HIDDEN2, MID, D_FINAL, NUM_LABELS)
    ref = _reference(pooled_output1, pooled_output2, params)

    # f32 weights: strict check against reference.
    logits_f32, loss = siamese_classification_head(
        sequence_output1, pooled_output1, sequence_output2, pooled_output2,
        params, weight_dtype=jnp.float32)
    logits_f32 = jax.block_until_ready(logits_f32)
    assert logits_f32.shape == (B, NUM_LABELS)
    assert loss is None
    assert jnp.allclose(logits_f32, ref, atol=1e-4, rtol=1e-4)

    # bf16 weights (recommended production config): relaxed tolerance vs f32 reference.
    logits_bf16, _ = siamese_classification_head(
        sequence_output1, pooled_output1, sequence_output2, pooled_output2,
        params, weight_dtype=jnp.bfloat16)
    logits_bf16 = jax.block_until_ready(logits_bf16)
    assert logits_bf16.shape == (B, NUM_LABELS)
    assert jnp.allclose(logits_bf16, ref, atol=1.5e-1, rtol=5e-2)

    print("KERNEL_OK")
</pallas_src>

<mosaic_0001>
module attributes {stable_mosaic.version = 11 : i64} {
  func.func @siamese_head_kernel(%arg0: i32, %arg1: memref<8x32xf32, #tpu.memory_space<vmem>>, %arg2: memref<8x32xf32, #tpu.memory_space<vmem>>, %arg3: memref<32x64xf32, #tpu.memory_space<vmem>>, %arg4: memref<1x64xf32, #tpu.memory_space<vmem>>, %arg5: memref<64x32xf32, #tpu.memory_space<vmem>>, %arg6: memref<1x32xf32, #tpu.memory_space<vmem>>, %arg7: memref<32x32xf32, #tpu.memory_space<vmem>>, %arg8: memref<1x32xf32, #tpu.memory_space<vmem>>, %arg9: memref<32x128xf32, #tpu.memory_space<vmem>>, %arg10: memref<1x128xf32, #tpu.memory_space<vmem>>, %arg11: memref<8x128xf32, #tpu.memory_space<vmem>>) attributes {dimension_semantics = [#tpu.dimension_semantics<parallel>], iteration_bounds = array<i64: 1>, scalar_prefetch = 0 : i64, scratch_operands = 0 : i64, tpu.core_type = #tpu.core_type<tc>, window_params = [{transform_indices = @transform_0, window_bounds = array<i64: 8, 32>}, {transform_indices = @transform_1, window_bounds = array<i64: 8, 32>}, {pipeline_mode = #tpu.pipeline_mode<synchronous>, transform_indices = @transform_2, window_bounds = array<i64: 32, 64>}, {pipeline_mode = #tpu.pipeline_mode<synchronous>, transform_indices = @transform_3, window_bounds = array<i64: 1, 64>}, {pipeline_mode = #tpu.pipeline_mode<synchronous>, transform_indices = @transform_4, window_bounds = array<i64: 64, 32>}, {pipeline_mode = #tpu.pipeline_mode<synchronous>, transform_indices = @transform_5, window_bounds = array<i64: 1, 32>}, {pipeline_mode = #tpu.pipeline_mode<synchronous>, transform_indices = @transform_6, window_bounds = array<i64: 32, 32>}, {pipeline_mode = #tpu.pipeline_mode<synchronous>, transform_indices = @transform_7, window_bounds = array<i64: 1, 32>}, {pipeline_mode = #tpu.pipeline_mode<synchronous>, transform_indices = @transform_8, window_bounds = array<i64: 32, 128>}, {pipeline_mode = #tpu.pipeline_mode<synchronous>, transform_indices = @transform_9, window_bounds = array<i64: 1, 128>}, {transform_indices = @transform_10, window_bounds = array<i64: 8, 128>}]} {
    %c0 = arith.constant 0 : index
    %c0_0 = arith.constant 0 : index
    %0 = vector.load %arg1[%c0, %c0_0] : memref<8x32xf32, #tpu.memory_space<vmem>>, vector<8x32xf32>
    %c0_1 = arith.constant 0 : index
    %c0_2 = arith.constant 0 : index
    %1 = vector.load %arg3[%c0_1, %c0_2] : memref<32x64xf32, #tpu.memory_space<vmem>>, vector<32x64xf32>
    %cst = arith.constant dense<0.000000e+00> : vector<8x64xf32>
    %2 = tpu.matmul %0, %1, %cst {dimension_numbers = #tpu.dot_dimension_numbers<[1], [0], [0], [1], [0, 0, 1, 1], [], []>} : vector<8x32xf32>, vector<32x64xf32>, vector<8x64xf32> -> vector<8x64xf32>
    %c0_3 = arith.constant 0 : index
    %c0_4 = arith.constant 0 : index
    %3 = vector.load %arg4[%c0_3, %c0_4] : memref<1x64xf32, #tpu.memory_space<vmem>>, vector<1x64xf32>
    %4 = vector.broadcast %3 : vector<1x64xf32> to vector<8x64xf32>
    %5 = arith.addf %2, %4 : vector<8x64xf32>
    %6 = arith.negf %5 : vector<8x64xf32>
    %7 = math.exp %6 : vector<8x64xf32>
    %cst_5 = arith.constant 1.000000e+00 : f32
    %8 = vector.broadcast %cst_5 : f32 to vector<8x64xf32>
    %9 = arith.addf %8, %7 : vector<8x64xf32>
    %10 = arith.divf %8, %9 : vector<8x64xf32>
    %11 = arith.mulf %5, %10 : vector<8x64xf32>
    %c0_6 = arith.constant 0 : index
    %c0_7 = arith.constant 0 : index
    %12 = vector.load %arg5[%c0_6, %c0_7] : memref<64x32xf32, #tpu.memory_space<vmem>>, vector<64x32xf32>
    %cst_8 = arith.constant dense<0.000000e+00> : vector<8x32xf32>
    %13 = tpu.matmul %11, %12, %cst_8 {dimension_numbers = #tpu.dot_dimension_numbers<[1], [0], [0], [1], [0, 0, 1, 1], [], []>} : vector<8x64xf32>, vector<64x32xf32>, vector<8x32xf32> -> vector<8x32xf32>
    %c0_9 = arith.constant 0 : index
    %c0_10 = arith.constant 0 : index
    %14 = vector.load %arg6[%c0_9, %c0_10] : memref<1x32xf32, #tpu.memory_space<vmem>>, vector<1x32xf32>
    %15 = vector.broadcast %14 : vector<1x32xf32> to vector<8x32xf32>
    %16 = arith.addf %13, %15 : vector<8x32xf32>
    %cst_11 = arith.constant 0.000000e+00 : f32
    %17 = vector.broadcast %cst_11 : f32 to vector<8x32xf32>
    %18 = arith.maximumf %16, %17 : vector<8x32xf32>
    %c0_12 = arith.constant 0 : index
    %c0_13 = arith.constant 0 : index
    %19 = vector.load %arg2[%c0_12, %c0_13] : memref<8x32xf32, #tpu.memory_space<vmem>>, vector<8x32xf32>
    %c0_14 = arith.constant 0 : index
    %c0_15 = arith.constant 0 : index
    %20 = vector.load %arg7[%c0_14, %c0_15] : memref<32x32xf32, #tpu.memory_space<vmem>>, vector<32x32xf32>
    %cst_16 = arith.constant dense<0.000000e+00> : vector<8x32xf32>
    %21 = tpu.matmul %19, %20, %cst_16 {dimension_numbers = #tpu.dot_dimension_numbers<[1], [0], [0], [1], [0, 0, 1, 1], [], []>} : vector<8x32xf32>, vector<32x32xf32>, vector<8x32xf32> -> vector<8x32xf32>
    %c0_17 = arith.constant 0 : index
    %c0_18 = arith.constant 0 : index
    %22 = vector.load %arg8[%c0_17, %c0_18] : memref<1x32xf32, #tpu.memory_space<vmem>>, vector<1x32xf32>
    %23 = vector.broadcast %22 : vector<1x32xf32> to vector<8x32xf32>
    %24 = arith.addf %21, %23 : vector<8x32xf32>
    %25 = arith.negf %24 : vector<8x32xf32>
    %26 = math.exp %25 : vector<8x32xf32>
    %cst_19 = arith.constant 1.000000e+00 : f32
    %27 = vector.broadcast %cst_19 : f32 to vector<8x32xf32>
    %28 = arith.addf %27, %26 : vector<8x32xf32>
    %29 = arith.divf %27, %28 : vector<8x32xf32>
    %30 = arith.mulf %24, %29 : vector<8x32xf32>
    %31 = arith.negf %18 : vector<8x32xf32>
    %32 = math.exp %31 : vector<8x32xf32>
    %cst_20 = arith.constant 1.000000e+00 : f32
    %33 = vector.broadcast %cst_20 : f32 to vector<8x32xf32>
    %34 = arith.addf %33, %32 : vector<8x32xf32>
    %35 = arith.divf %33, %34 : vector<8x32xf32>
    %36 = arith.mulf %18, %35 : vector<8x32xf32>
    %37 = arith.negf %30 : vector<8x32xf32>
    %38 = math.exp %37 : vector<8x32xf32>
    %cst_21 = arith.constant 1.000000e+00 : f32
    %39 = vector.broadcast %cst_21 : f32 to vector<8x32xf32>
    %40 = arith.addf %39, %38 : vector<8x32xf32>
    %41 = arith.divf %39, %40 : vector<8x32xf32>
    %42 = arith.mulf %30, %41 : vector<8x32xf32>
    %43 = arith.subf %36, %42 : vector<8x32xf32>
    %c0_22 = arith.constant 0 : index
    %c0_23 = arith.constant 0 : index
    %44 = vector.load %arg9[%c0_22, %c0_23] : memref<32x128xf32, #tpu.memory_space<vmem>>, vector<32x128xf32>
    %cst_24 = arith.constant dense<0.000000e+00> : vector<8x128xf32>
    %45 = tpu.matmul %43, %44, %cst_24 {dimension_numbers = #tpu.dot_dimension_numbers<[1], [0], [0], [1], [0, 0, 1, 1], [], []>} : vector<8x32xf32>, vector<32x128xf32>, vector<8x128xf32> -> vector<8x128xf32>
    %c0_25 = arith.constant 0 : index
    %c0_26 = arith.constant 0 : index
    %46 = vector.load %arg10[%c0_25, %c0_26] : memref<1x128xf32, #tpu.memory_space<vmem>>, vector<1x128xf32>
    %47 = vector.broadcast %46 : vector<1x128xf32> to vector<8x128xf32>
    %48 = arith.addf %45, %47 : vector<8x128xf32>
    %c0_27 = arith.constant 0 : index
    %c0_28 = arith.constant 0 : index
    %49 = vector.load %arg11[%c0_27, %c0_28] : memref<8x128xf32, #tpu.memory_space<vmem>>, vector<8x128xf32>
    tpu.vector_store %arg11[%c0_27, %c0_28], %48 {strides = array<i32>} : memref<8x128xf32, #tpu.memory_space<vmem>>, vector<8x128xf32>,
    return
  }
  func.func @transform_0(%arg0: i32) -> (i32, i32) {
    %c0_i32 = arith.constant 0 : i32
    %c0_i32_0 = arith.constant 0 : i32
    return %arg0, %c0_i32 : i32, i32
  }
  func.func @transform_1(%arg0: i32) -> (i32, i32) {
    %c0_i32 = arith.constant 0 : i32
    %c0_i32_0 = arith.constant 0 : i32
    return %arg0, %c0_i32 : i32, i32
  }
  func.func @transform_2(%arg0: i32) -> (i32, i32) {
    %c0_i32 = arith.constant 0 : i32
    %c0_i32_0 = arith.constant 0 : i32
    %c0_i32_1 = arith.constant 0 : i32
    return %c0_i32, %c0_i32_0 : i32, i32
  }
  func.func @transform_3(%arg0: i32) -> (i32, i32) {
    %c0_i32 = arith.constant 0 : i32
    %c0_i32_0 = arith.constant 0 : i32
    %c0_i32_1 = arith.constant 0 : i32
    return %c0_i32, %c0_i32_0 : i32, i32
  }
  func.func @transform_4(%arg0: i32) -> (i32, i32) {
    %c0_i32 = arith.constant 0 : i32
    %c0_i32_0 = arith.constant 0 : i32
    %c0_i32_1 = arith.constant 0 : i32
    return %c0_i32, %c0_i32_0 : i32, i32
  }
  func.func @transform_5(%arg0: i32) -> (i32, i32) {
    %c0_i32 = arith.constant 0 : i32
    %c0_i32_0 = arith.constant 0 : i32
    %c0_i32_1 = arith.constant 0 : i32
    return %c0_i32, %c0_i32_0 : i32, i32
  }
  func.func @transform_6(%arg0: i32) -> (i32, i32) {
    %c0_i32 = arith.constant 0 : i32
    %c0_i32_0 = arith.constant 0 : i32
    %c0_i32_1 = arith.constant 0 : i32
    return %c0_i32, %c0_i32_0 : i32, i32
  }
  func.func @transform_7(%arg0: i32) -> (i32, i32) {
    %c0_i32 = arith.constant 0 : i32
    %c0_i32_0 = arith.constant 0 : i32
    %c0_i32_1 = arith.constant 0 : i32
    return %c0_i32, %c0_i32_0 : i32, i32
  }
  func.func @transform_8(%arg0: i32) -> (i32, i32) {
    %c0_i32 = arith.constant 0 : i32
    %c0_i32_0 = arith.constant 0 : i32
    %c0_i32_1 = arith.constant 0 : i32
    return %c0_i32, %c0_i32_0 : i32, i32
  }
  func.func @transform_9(%arg0: i32) -> (i32, i32) {
    %c0_i32 = arith.constant 0 : i32
    %c0_i32_0 = arith.constant 0 : i32
    %c0_i32_1 = arith.constant 0 : i32
    return %c0_i32, %c0_i32_0 : i32, i32
  }
  func.func @transform_10(%arg0: i32) -> (i32, i32) {
    %c0_i32 = arith.constant 0 : i32
    %c0_i32_0 = arith.constant 0 : i32
    return %arg0, %c0_i32 : i32, i32
  }
}

</mosaic_0001>

<bundles_post_ra>
// kernel: siamese_classification_head.1
= control target key start
LH: loop header
LB: loop body
LE: loop exit
PB: predicated region body
PF: predicated region fallthrough
CT: control target
= control target key end

     0   :  { %v587_v3 = vmov 0.0|0.0   ;;  %vm588_vm0 = vmmov 0   ;;  %v589_v6 = vmov 0.0   ;;  %s753_s0 = inlined_call_operand.vmem [shape: f32[8,32], index: 0, kind: input, shape index: {}]   ;;  %s754_s1 = inlined_call_operand.vmem [shape: f32[8,32], index: 1, kind: input, shape index: {}]   ;;  %s755_s2 = inlined_call_operand.vmem [shape: f32[32,64], index: 2, kind: input, shape index: {}]   ;;  %s756_s3 = inlined_call_operand.vmem [shape: f32[1,64], index: 3, kind: input, shape index: {}]   ;;  %s757_s4 = inlined_call_operand.vmem [shape: f32[64,32], index: 4, kind: input, shape index: {}]   ;;  %s758_s5 = inlined_call_operand.vmem [shape: f32[1,32], index: 5, kind: input, shape index: {}]   ;;  %s759_s6 = inlined_call_operand.vmem [shape: f32[32,32], index: 6, kind: input, shape index: {}]   ;;  %s760_s7 = inlined_call_operand.vmem [shape: f32[1,32], index: 7, kind: input, shape index: {}]   ;;  %s761_s8 = inlined_call_operand.vmem [shape: f32[32,128], index: 8, kind: input, shape index: {}]   ;;  %s762_s9 = inlined_call_operand.vmem [shape: f32[1,128], index: 9, kind: input, shape index: {}]   ;;  %s763_s10 = inlined_call_operand.hbm [shape: f32[8,128], index: 10, kind: output, shape index: {}]  }
   0x1   :  { %v37_v0 = vld [vmem:[%s755_s2] sm:$0xff]  ;;  %v38_v1 = vld [vmem:[%s755_s2 + $0x8] sm:$0xff]  ;;  %v39_v2 = vld [vmem:[%s755_s2 + $0x10] sm:$0xff]  ;;  %513 = vmatprep.subr.bf16.mxu0 %v587_v3  ;;  %469 = vmatprep.mubr.msk.f32.mxu0 %vm588_vm0, %v589_v6 }
   0x2   :  { %v514_v4 = vpack.c.bf16 %v38_v1, %v37_v0  ;;  %v40_v5 = vld [vmem:[%s755_s2 + $0x18] sm:$0xff]  ;;  %519 = vmatprep.subr.bf16.mxu1 %v587_v3  ;;  %488 = vmatprep.mubr.msk.f32.mxu1 %vm588_vm0, %v589_v6 }
   0x3   :  { %v517_v7 = vpack.c.bf16 %v40_v5, %v39_v2 }
   0x4   :  { %515 = vmatpush3.bf16.msra.mxu0 %v514_v4 }
   0x5   :  { %15 = vsyncpa [#allocation3], 0  ;;  %516 = vmatprep.subr.bf16.mxu0 %v587_v3  ;;  %v220_v8 = vld [vmem:[%s759_s6] sm:$0xff]  ;;  %v221_v9 = vld [vmem:[%s759_s6 + $0x8] sm:$0xff]  ;;  %vm48_vm1 = vcmask 261120   ;;  %vm144_vm2 = vcmask 523264  }
   0x6   :  { %v36_v10 = vld [vmem:[%s753_s0] sm:$0xff]  ;;  %v532_v11 = vpack.c.bf16 %v221_v9, %v220_v8  ;;  %v222_v12 = vld [vmem:[%s759_s6 + $0x10] sm:$0xff]  ;;  %v223_v13 = vld [vmem:[%s759_s6 + $0x18] sm:$0xff] }
   0x7   :  { %v535_v14 = vpack.c.bf16 %v223_v13, %v222_v12  ;;  %v219_v15 = vld [vmem:[%s754_s1] sm:$0xff]  ;;  %v130_v17 = vld [vmem:[%s757_s4 + $0x8] sm:$0xff]  ;;  %v131_v19 = vld [vmem:[%s757_s4 + $0x10] sm:$0xff] }
   0x8   :  { %518 = vmatpush3.bf16.msra.mxu0 %v517_v7  ;;  %v129_v16 = vld [vmem:[%s757_s4] sm:$0xff]  ;;  %v132_v20 = vld [vmem:[%s757_s4 + $0x18] sm:$0xff]  ;;  %v134_v23 = vld [vmem:[%s757_s4 + $0x28] sm:$0xff] }
   0x9   :  { %531 = vmatprep.subr.bf16.mxu0 %v587_v3  ;;  %v520_v18 = vpack.c.bf16 %v130_v17, %v129_v16  ;;  %v523_v21 = vpack.c.bf16 %v132_v20, %v131_v19  ;;  %v133_v22 = vld [vmem:[%s757_s4 + $0x20] sm:$0xff]  ;;  %v135_v25 = vld [vmem:[%s757_s4 + $0x30] sm:$0xff]  ;;  %v136_v26 = vld [vmem:[%s757_s4 + $0x38] sm:$0xff] }
   0xa   :  { %v526_v24 = vpack.c.bf16 %v134_v23, %v133_v22  ;;  %v529_v27 = vpack.c.bf16 %v136_v26, %v135_v25  ;;  %v425_v28 = vld [vmem:[%s756_s3] ss:$0 sm:$0xff]  ;;  %v327_v40 = vld [vmem:[%s761_s8 + $0x8] sm:$0xff]  ;;  %v328_v42 = vld [vmem:[%s761_s8 + $0x10] sm:$0xff] }
   0xb   :  { %470 = vmatmul.mubr.msk.f32.vlgmr.msra.gmra.mrb[0].mxu0 %vm48_vm1, %v36_v10  ;;  %521 = vmatpush3.bf16.msra.mxu1 %v520_v18  ;;  %v326_v39 = vld [vmem:[%s761_s8] sm:$0xff]  ;;  %v329_v43 = vld [vmem:[%s761_s8 + $0x18] sm:$0xff]  ;;  %s590_s8 = smov [#allocation2]  }
   0xc   :  { %533 = vmatpush3.bf16.msra.mxu0 %v532_v11  ;;  %499 = vmatprep.mubr.msk.f32.mxu0 %vm588_vm0, %v589_v6  ;;  %v538_v41 = vpack.c.bf16 %v327_v40, %v326_v39  ;;  %v541_v44 = vpack.c.bf16 %v329_v43, %v328_v42  ;;  %v430_v45 = vld [vmem:[%s760_s7] ss:$0 sm:$0xff]  ;;  %s417_s14 = sshll.u32 %s590_s8, 4  ;;  %s418_s14 = int_to_ptr.vmem [resolvable:$true] %s417_s14 }
   0xd   :  { %534 = vmatprep.subr.bf16.mxu0 %v587_v3  ;;  %522 = vmatprep.subr.bf16.mxu1 %v587_v3  ;;  %v428_v53 = vld [vmem:[%s758_s5] ss:$0 sm:$0xff]  ;;  %s563_s1 = scalar_lea.vmem %s418_s14, 128  ;;  %p568_p1 = scmp.lt.s32.totalorder %s418_s14, %s418_s14 }
   0xe   :  { %v435_v4 = vld [vmem:[%s762_s9] ss:$0 sm:$0xff]  ;;  %p564_p0 = scmp.ne.s32.totalorder %s418_s14, %s563_s1  ;;  %p569_p2 = scmp.lt.s32.totalorder %s563_s1, %s563_s1 }
   0xf   :  { %524 = vmatpush3.bf16.msra.mxu1 %v523_v21 }
  0x10   :  { %536 = vmatpush3.bf16.msra.mxu0 %v535_v14  ;;  %525 = vmatprep.subr.bf16.mxu1 %v587_v3  ;;  %p570_p3 = por %p569_p2, %p568_p1 }
  0x11   :  { %537 = vmatprep.subr.bf16.mxu0 %v587_v3 }
  0x12   :  { %p571_p4 = pnand %p570_p3, %p564_p0 }
  0x13   :  { %500 = vmatmul.mubr.msk.f32.vlgmr.msra.gmra.mrb[2].mxu0 %vm48_vm1, %v219_v15  ;;  %527 = vmatpush3.bf16.msra.mxu1 %v526_v24 }
  0x14   :  { %510 = vmatprep.mubr.msk.f32.mxu0 %vm588_vm0, %v589_v6  ;;  %528 = vmatprep.subr.bf16.mxu1 %v587_v3 }
  0x15   :  { %539 = vmatpush3.bf16.msra.mxu0 %v538_v41 }
  0x16   :  { %540 = vmatprep.subr.bf16.mxu0 %v587_v3 }
  0x17   :  { %530 = vmatpush3.bf16.msra.mxu1 %v529_v27 }
  0x19   :  { %542 = vmatpush3.bf16.msra.mxu0 %v541_v44 }
  0xde   :  { %v118_v29 = vpop.f32.mrb[0].mxu0 }
  0xdf   :  { %v119_v30 = vadd.f32 %v425_v28, %v118_v29  ;;  %v471_v31 = vpop.f32.mrb[1].mxu0 }
  0xe1   :  { %v427_v32 = vmul.f32 -1.442695, %v119_v30 }
  0xe3   :  { %547 = vpow2.f32 %v427_v32 }
  0xe6   :  { %v300_v33 = vpop.f32.mrb[2].mxu0 }
  0xe7   :  { %v501_v34 = vpop.f32.mrb[3].mxu0  ;;  %v301_v46 = vadd.f32 %v430_v45, %v300_v33 }
  0xe9   :  { %v432_v47 = vmul.f32 -1.442695, %v301_v46 }
  0xed   :  { %v548_v35 = vpop.eup %547 }
  0xee   :  { %v125_v36 = vadd.f32 1.0, %v548_v35 }
  0xf0   :  { %549 = vrcp.f32 %v125_v36 }
  0xf1   :  { %551 = vpow2.f32 %v432_v47 }
  0xfa   :  { %v550_v37 = vpop.eup %549 }
  0xfb   :  { %v128_v38 = vmul.f32 %v550_v37, %v119_v30  ;;  %v552_v48 = vpop.eup %551 }
  0xfc   :  { %v307_v49 = vadd.f32 1.0, %v552_v48 }
  0xfd   :  { %489 = vmatmul.mubr.msk.f32.vlgmr.msra.gmra.mrb[0].mxu1 %vm144_vm2, %v128_v38 }
  0xfe   :  { %553 = vrcp.f32 %v307_v49 }
 0x108   :  { %v554_v50 = vpop.eup %553 }
 0x109   :  { %v310_v51 = vmul.f32 %v554_v50, %v301_v46 }
 0x10b   :  { %v434_v52 = vmul.f32 -1.442695, %v310_v51 }
 0x10d   :  { %555 = vpow2.f32 %v434_v52 }
 0x117   :  { %v556_v59 = vpop.eup %555 }
 0x118   :  { %v321_v60 = vadd.f32 1.0, %v556_v59 }
 0x1d0   :  { %v214_v54 = vpop.f32.mrb[0].mxu1 }
 0x1d1   :  { %v215_v55 = vadd.f32 %v428_v53, %v214_v54  ;;  %v490_v56 = vpop.f32.mrb[1].mxu1 }
 0x1d3   :  { %v218_v57 = vmax.f32 %v215_v55, 0.0 }
 0x1d5   :  { %v433_v58 = vmul.f32 -1.442695, %v218_v57 }
 0x1d7   :  { %557 = vpow2.f32 %v433_v58 }
 0x1d8   :  { %559 = vrcp.f32 %v321_v60 }
 0x1e1   :  { %v558_v61 = vpop.eup %557 }
 0x1e2   :  { %v314_v62 = vadd.f32 1.0, %v558_v61  ;;  %v560_v63 = vpop.eup %559 }
 0x1e3   :  { %v324_v1 = vmul.f32 %v560_v63, %v310_v51 }
 0x1e4   :  { %561 = vrcp.f32 %v314_v62 }
 0x1ee   :  { %v562_v0 = vpop.eup %561 }
 0x1ef   :  { %v317_v2 = vmul.f32 %v562_v0, %v218_v57 }
 0x1f1   :  { %v325_v3 = vsub.f32 %v317_v2, %v324_v1 }
 0x1f3   :  { %511 = vmatmul.mubr.msk.f32.vlgmr.msra.gmra.mrb[4].mxu0 %vm48_vm1, %v325_v3 }
 0x2c6   :  { %v406_v5 = vpop.f32.mrb[4].mxu0 }
 0x2c7   :  { %v407_v6 = vadd.f32 %v435_v4, %v406_v5  ;;  %v512_v7 = vpop.f32.mrb[5].mxu0 }
 0x2c9   :  { %410 = vst [vmem:[#allocation2] sm:$0xff] %v407_v6 }
 0x2ca   :  { %574 = shalt.err (!%p571_p4)
}
 0x2cb   :  { %s575_s17 = scalar_lea.hbm %s763_s10, 128 }
 0x2cc   :  { %p576_p5 = scmp.ne.s32.totalorder %s763_s10, %s575_s17  ;;  %p579_p6 = scmp.lt.u32.totalorder %s575_s17, %s763_s10 }
 0x2ce   :  { %p581_p7 = pnand %p579_p6, %p576_p5 }
 0x2d0   :  { %584 = shalt.err (!%p581_p7)
}
 0x2d1   :  { %420 = dma.vmem_to_hbm [thread:$0]  %s418_s14, 128, %s763_s10, [#allocation3]  }
 0x2d2   :  { %585 = dma.done.wait [#allocation3], 128  }
 0x2d3   :  { %586 = vsyncadd [#allocation3], 4294967168 }
 0x2d4   :  { %424 = vsyncpa [#allocation3], 1 }

</bundles_post_ra>
